<compile_context>
chip_gen: v5e
topology: v5e:2x2
jax: 0.10.0
libtpu: 0.0.40
codegen_flags: <defaults>
</compile_context>

<pallas_src>
import functools
import math

import jax
import jax.numpy as jnp
from jax.experimental import pallas as pl
from jax.experimental.pallas import tpu as pltpu

_NEG_BIG = -1e30  # effectively -inf for f32 softmax masking


def _round_up(x, m):
    return ((x + m - 1) // m) * m


def _vmem_capacity_bytes():
    try:
        info = pltpu.get_tpu_info()
        cap = getattr(info, "vmem_capacity_bytes", None)
        if cap:
            return int(cap)
    except Exception:
        pass
    return 64 << 20  # conservative (v7x per-TensorCore VMEM)


_VMEM_PHYS = _vmem_capacity_bytes()


def _spec(block_shape, index_map, buffers=None):
    """BlockSpec, optionally requesting an explicit buffer count (resident inputs)."""
    if buffers is None:
        return pl.BlockSpec(block_shape, index_map)
    try:
        return pl.BlockSpec(block_shape, index_map,
                            pipeline_mode=pl.Buffered(buffers))
    except Exception:
        # Older API without pipeline_mode: fall back to default double-buffering.
        return pl.BlockSpec(block_shape, index_map)


def _choose_batch_tile(B_pad, F, elem_bytes, x_target_bytes):
    """Largest multiple-of-8 divisor of B_pad under the per-buffer byte target."""
    cap = max(8, (x_target_bytes // max(F * elem_bytes, 1)) // 8 * 8)
    if cap >= 256:
        cap = cap // 256 * 256  # keep the MXU M dim a multiple of 256 when big
    target = min(cap, B_pad)
    # Keep >= 2 grid steps when the batch allows it (v7x megacore sharding).
    if B_pad >= 16 and target >= B_pad:
        target = max(8, (B_pad // 2) // 8 * 8)
    tb = 8
    for cand in range(target - target % 8, 7, -8):
        if B_pad % cand == 0:
            tb = cand
            break
    return tb


def _choose_k_tile(F, C_pad, w_elem_bytes, w_budget_bytes):
    """Resident weight (TK = F) when it fits the budget; otherwise tile F."""
    if F * C_pad * w_elem_bytes <= w_budget_bytes or F % 128 != 0:
        return F  # resident (or F not 128-divisible: keep it whole)
    per_buf = max(1, w_budget_bytes // 2)  # streamed weight is double-buffered
    cap = max(128, (per_buf // (C_pad * w_elem_bytes)) // 128 * 128)
    start = min(cap, F)
    tk = 128
    for cand in range(start - start % 128, 127, -128):
        if F % cand == 0:
            tk = cand
            break
    return tk


def _head_kernel(x_ref, w_ref, b_ref, logits_ref, probs_ref, acc_ref):
    # x_ref:      (TB, TK)     activation tile
    # w_ref:      (TK, C_pad)  weight tile, already transposed to (in, out) layout
    # b_ref:      (1, C_pad)   bias; padded class lanes hold -1e30 (softmax mask)
    # logits_ref: (TB, C_pad)  output (resident across the K axis)
    # probs_ref:  (TB, C_pad)  output (resident across the K axis)
    # acc_ref:    (TB, C_pad)  f32 accumulator scratch
    k = pl.program_id(1)

    @pl.when(k == 0)
    def _():
        acc_ref[...] = jnp.zeros_like(acc_ref)

    # Native (M, K) x (K, N) MXU matmul, f32 accumulation.
    acc_ref[...] += jnp.dot(x_ref[...], w_ref[...],
                            preferred_element_type=jnp.float32)

    @pl.when(k == pl.num_programs(1) - 1)
    def _():
        logits = acc_ref[...] + b_ref[...]   # padded class lanes become ~-inf
        logits_ref[...] = logits.astype(logits_ref.dtype)

        # Softmax over the class axis (dim=1). Padded lanes: exp(-1e30 - m) == 0.
        m = jnp.max(logits, axis=-1, keepdims=True)
        e = jnp.exp(logits - m)
        d = jnp.sum(e, axis=-1, keepdims=True)
        r = pl.reciprocal(d, approx=True)
        r = r * (2.0 - d * r)                # one Newton-Raphson step -> ~f32 exact
        probs_ref[...] = (e * r).astype(probs_ref.dtype)


def _model_b_forward(x_nchw, weight, bias):
    """ModelB forward.

    x_nchw: (B, C, H, W) input to modelA (identity here -> F = C*H*W).
    weight: (num_classes, F) -- PyTorch nn.Linear weight layout (out, in).
    bias:   (num_classes,)
    Returns (logits, probs), each (B, num_classes), matching the PyTorch module.
    """
    B = x_nchw.shape[0]
    F = math.prod(x_nchw.shape[1:])
    C = weight.shape[0]
    assert weight.shape == (C, F)

    # modelA (identity) + flatten -> (B, F); plain-JAX glue outside the kernel.
    x2d = x_nchw.reshape(B, F)
    elem = x2d.dtype.itemsize
    w_elem = weight.dtype.itemsize

    # Lane-dense padding of the class axis to a full 128-lane vreg.
    C_pad = _round_up(C, 128)
    # Pad batch only to a sublane multiple (8); TB is then chosen to divide B_pad,
    # so at most 7 padded rows (no near-duplicate copy of the activation stream).
    B_pad = _round_up(B, 8)

    big_vmem = _VMEM_PHYS >= (100 << 20)          # v5e/v6e (128 MiB) vs v7x (64 MiB)
    x_target = (6 << 20) if big_vmem else (2 << 20)   # per x buffer
    w_budget = _VMEM_PHYS // 4                         # resident-weight budget

    TB = _choose_batch_tile(B_pad, F, elem, x_target)
    TK = _choose_k_tile(F, C_pad, w_elem, w_budget)
    nb = B_pad // TB
    nk = F // TK

    if B_pad != B:
        x2d = jnp.pad(x2d, ((0, B_pad - B), (0, 0)))
    # One-time lane-dense transpose of the weight to (F, C_pad); zero-pad classes.
    w_fc = jnp.pad(weight.T, ((0, 0), (0, C_pad - C)))
    # Bias with -1e30 in padded class lanes: this *is* the softmax mask.
    b2d = jnp.full((1, C_pad), _NEG_BIG, jnp.float32).at[0, :C].set(
        bias.astype(jnp.float32))

    # Scoped VMEM: double-buffered x, weight counted at 2x (in case Buffered(1) is
    # unavailable), sublane-padded bias, accumulator scratch, double-buffered outputs.
    vmem_need = (
        2 * TB * TK * elem
        + 2 * TK * C_pad * w_elem
        + 2 * 8 * C_pad * 4
        + TB * C_pad * 4
        + 2 * 2 * TB * C_pad * 4
    )
    vmem_cap = (_VMEM_PHYS * 3) // 4              # never claim the whole VMEM
    vmem_limit = int(min(max(vmem_need + (4 << 20), 16 << 20), vmem_cap))

    cost = pl.CostEstimate(
        flops=2 * B_pad * F * C_pad,
        transcendentals=B_pad * C_pad,
        bytes_accessed=(B_pad * F * elem
                        + (1 if nk == 1 else nb) * F * C_pad * w_elem
                        + 2 * B_pad * C_pad * 4),
    )

    in_specs = [
        pl.BlockSpec((TB, TK), lambda i, k: (i, k)),
        _spec((TK, C_pad), lambda i, k: (k, 0),
              buffers=(1 if nk == 1 else None)),   # resident weight: single-buffered
        _spec((1, C_pad), lambda i, k: (0, 0), buffers=1),
    ]
    out_specs = (
        pl.BlockSpec((TB, C_pad), lambda i, k: (i, 0)),
        pl.BlockSpec((TB, C_pad), lambda i, k: (i, 0)),
    )

    logits_pad, probs_pad = pl.pallas_call(
        _head_kernel,
        out_shape=(
            jax.ShapeDtypeStruct((B_pad, C_pad), jnp.float32),
            jax.ShapeDtypeStruct((B_pad, C_pad), jnp.float32),
        ),
        grid=(nb, nk),
        in_specs=in_specs,
        out_specs=out_specs,
        scratch_shapes=[pltpu.VMEM((TB, C_pad), jnp.float32)],
        compiler_params=pltpu.CompilerParams(
            dimension_semantics=("parallel", "arbitrary"),
            vmem_limit_bytes=vmem_limit,
        ),
        cost_estimate=cost,
    )(x2d, w_fc, b2d)

    return logits_pad[:B, :C], probs_pad[:B, :C]


# Jit the wrapper so the pad/transpose prologue fuses with the surrounding graph.
model_b_forward = jax.jit(_model_b_forward)


if __name__ == "__main__":
    # Small shapes consistent with the module: batch=2, channels=4, spatial=16.
    B, Cin, H, W = 2, 4, 16, 16
    base_output_shape = Cin * H * W  # 1024 (modelA == identity)
    output_classes = 2

    key = jax.random.PRNGKey(0)
    kx, kw, kb = jax.random.split(key, 3)

    x = jax.random.normal(kx, (B, Cin, H, W), dtype=jnp.float32)
    # nn.Linear(base_output_shape, output_classes).weight has shape (out, in).
    weight = jax.random.normal(
        kw, (output_classes, base_output_shape), dtype=jnp.float32) * 0.02
    bias = jax.random.normal(kb, (output_classes,), dtype=jnp.float32) * 0.02

    logits, probs = model_b_forward(x, weight, bias)
    jax.block_until_ready((logits, probs))

    # Correctness check against a plain-JAX reference of the PyTorch module.
    ref_logits = x.reshape(B, -1) @ weight.T + bias[None, :]
    ref_probs = jax.nn.softmax(ref_logits, axis=1)
    assert logits.shape == (B, output_classes) and probs.shape == (B, output_classes)
    # Tolerance covers the default-precision (bf16-pass) MXU f32 matmul vs XLA.
    assert jnp.allclose(logits, ref_logits, atol=5e-3, rtol=5e-3)
    assert jnp.allclose(probs, ref_probs, atol=5e-3, rtol=5e-3)
    # Normalization is f32-accurate thanks to the Newton-Raphson refined reciprocal.
    assert jnp.allclose(jnp.sum(probs, axis=1), 1.0, atol=1e-5)

    print("KERNEL_OK")
</pallas_src>

<mosaic_0001>
module attributes {stable_mosaic.version = 11 : i64} {
  func.func @_head_kernel(%arg0: i32, %arg1: i32, %arg2: memref<8x1024xf32, #tpu.memory_space<vmem>>, %arg3: memref<1024x128xf32, #tpu.memory_space<vmem>>, %arg4: memref<1x128xf32, #tpu.memory_space<vmem>>, %arg5: memref<8x128xf32, #tpu.memory_space<vmem>>, %arg6: memref<8x128xf32, #tpu.memory_space<vmem>>, %arg7: memref<8x128xf32, #tpu.memory_space<vmem>>) attributes {dimension_semantics = [#tpu.dimension_semantics<parallel>, #tpu.dimension_semantics<arbitrary>], iteration_bounds = array<i64: 1, 1>, scalar_prefetch = 0 : i64, scratch_operands = 1 : i64, tpu.core_type = #tpu.core_type<tc>, window_params = [{transform_indices = @transform_0, window_bounds = array<i64: 8, 1024>}, {pipeline_mode = #tpu.pipeline_mode<synchronous>, transform_indices = @transform_1, window_bounds = array<i64: 1024, 128>}, {pipeline_mode = #tpu.pipeline_mode<synchronous>, transform_indices = @transform_2, window_bounds = array<i64: 1, 128>}, {transform_indices = @transform_3, window_bounds = array<i64: 8, 128>}, {transform_indices = @transform_4, window_bounds = array<i64: 8, 128>}]} {
    %c0_i32 = arith.constant 0 : i32
    %0 = arith.cmpi eq, %arg1, %c0_i32 : i32
    %1 = arith.extui %0 : i1 to i32
    %c0_i32_0 = arith.constant 0 : i32
    %2 = arith.cmpi ne, %1, %c0_i32_0 : i32
    scf.if %2 {
      %cst_10 = arith.constant 0.000000e+00 : f32
      %12 = vector.broadcast %cst_10 : f32 to vector<8x128xf32>
      %c0_11 = arith.constant 0 : index
      %c0_12 = arith.constant 0 : index
      %13 = vector.load %arg7[%c0_11, %c0_12] : memref<8x128xf32, #tpu.memory_space<vmem>>, vector<8x128xf32>
      tpu.vector_store %arg7[%c0_11, %c0_12], %12 {strides = array<i32>} : memref<8x128xf32, #tpu.memory_space<vmem>>, vector<8x128xf32>,
    } else {
    }
    %c0 = arith.constant 0 : index
    %c0_1 = arith.constant 0 : index
    %3 = vector.load %arg7[%c0, %c0_1] : memref<8x128xf32, #tpu.memory_space<vmem>>, vector<8x128xf32>
    %c0_2 = arith.constant 0 : index
    %c0_3 = arith.constant 0 : index
    %4 = vector.load %arg2[%c0_2, %c0_3] : memref<8x1024xf32, #tpu.memory_space<vmem>>, vector<8x1024xf32>
    %c0_4 = arith.constant 0 : index
    %c0_5 = arith.constant 0 : index
    %5 = vector.load %arg3[%c0_4, %c0_5] : memref<1024x128xf32, #tpu.memory_space<vmem>>, vector<1024x128xf32>
    %cst = arith.constant dense<0.000000e+00> : vector<8x128xf32>
    %6 = tpu.matmul %4, %5, %cst {dimension_numbers = #tpu.dot_dimension_numbers<[1], [0], [0], [1], [0, 0, 1, 1], [], []>} : vector<8x1024xf32>, vector<1024x128xf32>, vector<8x128xf32> -> vector<8x128xf32>
    %7 = arith.addf %3, %6 : vector<8x128xf32>
    %c0_6 = arith.constant 0 : index
    %c0_7 = arith.constant 0 : index
    %8 = vector.load %arg7[%c0_6, %c0_7] : memref<8x128xf32, #tpu.memory_space<vmem>>, vector<8x128xf32>
    tpu.vector_store %arg7[%c0_6, %c0_7], %7 {strides = array<i32>} : memref<8x128xf32, #tpu.memory_space<vmem>>, vector<8x128xf32>,
    %c0_i32_8 = arith.constant 0 : i32
    %9 = arith.cmpi eq, %arg1, %c0_i32_8 : i32
    %10 = arith.extui %9 : i1 to i32
    %c0_i32_9 = arith.constant 0 : i32
    %11 = arith.cmpi ne, %10, %c0_i32_9 : i32
    scf.if %11 {
      %c0_10 = arith.constant 0 : index
      %c0_11 = arith.constant 0 : index
      %12 = vector.load %arg7[%c0_10, %c0_11] : memref<8x128xf32, #tpu.memory_space<vmem>>, vector<8x128xf32>
      %c0_12 = arith.constant 0 : index
      %c0_13 = arith.constant 0 : index
      %13 = vector.load %arg4[%c0_12, %c0_13] : memref<1x128xf32, #tpu.memory_space<vmem>>, vector<1x128xf32>
      %14 = vector.broadcast %13 : vector<1x128xf32> to vector<8x128xf32>
      %15 = arith.addf %12, %14 : vector<8x128xf32>
      %c0_14 = arith.constant 0 : index
      %c0_15 = arith.constant 0 : index
      %16 = vector.load %arg5[%c0_14, %c0_15] : memref<8x128xf32, #tpu.memory_space<vmem>>, vector<8x128xf32>
      tpu.vector_store %arg5[%c0_14, %c0_15], %15 {strides = array<i32>} : memref<8x128xf32, #tpu.memory_space<vmem>>, vector<8x128xf32>,
      %cst_16 = arith.constant dense<0xFF800000> : vector<8xf32>
      %17 = vector.multi_reduction <maximumf>, %15, %cst_16 [1] : vector<8x128xf32> to vector<8xf32>
      %18 = vector.shape_cast %17 : vector<8xf32> to vector<8x1xf32>
      %19 = vector.broadcast %18 : vector<8x1xf32> to vector<8x128xf32>
      %20 = arith.subf %15, %19 : vector<8x128xf32>
      %21 = math.exp %20 : vector<8x128xf32>
      %cst_17 = arith.constant dense<0.000000e+00> : vector<8xf32>
      %22 = vector.multi_reduction <add>, %21, %cst_17 [1] : vector<8x128xf32> to vector<8xf32>
      %23 = vector.shape_cast %22 : vector<8xf32> to vector<8x1xf32>
      %24 = tpu.reciprocal %23 {approx = true} : vector<8x1xf32> -> vector<8x1xf32>
      %25 = arith.mulf %23, %24 : vector<8x1xf32>
      %cst_18 = arith.constant 2.000000e+00 : f32
      %26 = vector.broadcast %cst_18 : f32 to vector<8x1xf32>
      %27 = arith.subf %26, %25 : vector<8x1xf32>
      %28 = arith.mulf %24, %27 : vector<8x1xf32>
      %29 = vector.broadcast %28 : vector<8x1xf32> to vector<8x128xf32>
      %30 = arith.mulf %21, %29 : vector<8x128xf32>
      %c0_19 = arith.constant 0 : index
      %c0_20 = arith.constant 0 : index
      %31 = vector.load %arg6[%c0_19, %c0_20] : memref<8x128xf32, #tpu.memory_space<vmem>>, vector<8x128xf32>
      tpu.vector_store %arg6[%c0_19, %c0_20], %30 {strides = array<i32>} : memref<8x128xf32, #tpu.memory_space<vmem>>, vector<8x128xf32>,
    } else {
    }
    return
  }
  func.func @transform_0(%arg0: i32, %arg1: i32) -> (i32, i32) {
    %c0_i32 = arith.constant 0 : i32
    return %arg0, %arg1 : i32, i32
  }
  func.func @transform_1(%arg0: i32, %arg1: i32) -> (i32, i32) {
    %c0_i32 = arith.constant 0 : i32
    %c0_i32_0 = arith.constant 0 : i32
    return %arg1, %c0_i32 : i32, i32
  }
  func.func @transform_2(%arg0: i32, %arg1: i32) -> (i32, i32) {
    %c0_i32 = arith.constant 0 : i32
    %c0_i32_0 = arith.constant 0 : i32
    %c0_i32_1 = arith.constant 0 : i32
    return %c0_i32, %c0_i32_0 : i32, i32
  }
  func.func @transform_3(%arg0: i32, %arg1: i32) -> (i32, i32) {
    %c0_i32 = arith.constant 0 : i32
    %c0_i32_0 = arith.constant 0 : i32
    return %arg0, %c0_i32 : i32, i32
  }
  func.func @transform_4(%arg0: i32, %arg1: i32) -> (i32, i32) {
    %c0_i32 = arith.constant 0 : i32
    %c0_i32_0 = arith.constant 0 : i32
    return %arg0, %c0_i32 : i32, i32
  }
}

</mosaic_0001>

<bundles_post_ra>
// kernel: _model_b_forward.1
= control target key start
LH: loop header
LB: loop body
LE: loop exit
PB: predicated region body
PF: predicated region fallthrough
CT: control target
= control target key end

     0   :  { %s798_s1 = inlined_call_operand.vmem [shape: f32[1024,128], index: 1, kind: input, shape index: {}]   ;;  %s799_s0 = inlined_call_operand.vmem [shape: f32[8,1024], index: 0, kind: input, shape index: {}]   ;;  %s800_s2 = inlined_call_operand.vmem [shape: f32[1,128], index: 2, kind: input, shape index: {}]   ;;  %s801_s3 = inlined_call_operand.vmem [shape: f32[8,128], index: 3, kind: output, shape index: {0}]   ;;  %s802_s4 = inlined_call_operand.vmem [shape: f32[8,128], index: 4, kind: output, shape index: {1}]  }
   0x1   :  { %v45_v0 = vld [vmem:[%s798_s1 + $0x78] sm:$0xff]  ;;  %v44_v2 = vld [vmem:[%s798_s1 + $0x70] sm:$0xff]  ;;  %v43_v6 = vld [vmem:[%s798_s1 + $0x68] sm:$0xff] }
   0x2   :  { %v77_v1 = vld [vmem:[%s798_s1 + $0x178] sm:$0xff]  ;;  %158 = vmatpush.msra.mxu0 %v45_v0  ;;  %v76_v4 = vld [vmem:[%s798_s1 + $0x170] sm:$0xff]  ;;  %v75_v8 = vld [vmem:[%s798_s1 + $0x168] sm:$0xff] }
   0x3   :  { %198 = vmatpush.msra.mxu2 %v77_v1  ;;  %v61_v3 = vld [vmem:[%s798_s1 + $0xf8] sm:$0xff]  ;;  %v60_v7 = vld [vmem:[%s798_s1 + $0xf0] sm:$0xff]  ;;  %v59_v10 = vld [vmem:[%s798_s1 + $0xe8] sm:$0xff] }
   0x4   :  { %v93_v5 = vld [vmem:[%s798_s1 + $0x1f8] sm:$0xff]  ;;  %178 = vmatpush.msra.mxu1 %v61_v3  ;;  %159 = vmatpush.msra.mxu0 %v44_v2  ;;  %v92_v9 = vld [vmem:[%s798_s1 + $0x1f0] sm:$0xff]  ;;  %v42_v11 = vld [vmem:[%s798_s1 + $0x60] sm:$0xff] }
   0x5   :  { %218 = vmatpush.msra.mxu3 %v93_v5  ;;  %199 = vmatpush.msra.mxu2 %v76_v4  ;;  %v74_v12 = vld [vmem:[%s798_s1 + $0x160] sm:$0xff]  ;;  %v91_v13 = vld [vmem:[%s798_s1 + $0x1e8] sm:$0xff]  ;;  %v41_v16 = vld [vmem:[%s798_s1 + $0x58] sm:$0xff] }
   0x6   :  { %179 = vmatpush.msra.mxu1 %v60_v7  ;;  %160 = vmatpush.msra.mxu0 %v43_v6  ;;  %v58_v14 = vld [vmem:[%s798_s1 + $0xe0] sm:$0xff]  ;;  %v73_v17 = vld [vmem:[%s798_s1 + $0x158] sm:$0xff]  ;;  %v40_v20 = vld [vmem:[%s798_s1 + $0x50] sm:$0xff] }
   0x7   :  { %219 = vmatpush.msra.mxu3 %v92_v9  ;;  %200 = vmatpush.msra.mxu2 %v75_v8  ;;  %v90_v15 = vld [vmem:[%s798_s1 + $0x1e0] sm:$0xff]  ;;  %v57_v18 = vld [vmem:[%s798_s1 + $0xd8] sm:$0xff]  ;;  %v72_v21 = vld [vmem:[%s798_s1 + $0x150] sm:$0xff] }
   0x8   :  { %180 = vmatpush.msra.mxu1 %v59_v10  ;;  %161 = vmatpush.msra.mxu0 %v42_v11  ;;  %v89_v19 = vld [vmem:[%s798_s1 + $0x1d8] sm:$0xff]  ;;  %v56_v22 = vld [vmem:[%s798_s1 + $0xd0] sm:$0xff]  ;;  %v39_v24 = vld [vmem:[%s798_s1 + $0x48] sm:$0xff] }
   0x9   :  { %220 = vmatpush.msra.mxu3 %v91_v13  ;;  %201 = vmatpush.msra.mxu2 %v74_v12  ;;  %v88_v23 = vld [vmem:[%s798_s1 + $0x1d0] sm:$0xff]  ;;  %v71_v25 = vld [vmem:[%s798_s1 + $0x148] sm:$0xff]  ;;  %v38_v28 = vld [vmem:[%s798_s1 + $0x40] sm:$0xff] }
   0xa   :  { %181 = vmatpush.msra.mxu1 %v58_v14  ;;  %162 = vmatpush.msra.mxu0 %v41_v16  ;;  %v55_v26 = vld [vmem:[%s798_s1 + $0xc8] sm:$0xff]  ;;  %v70_v29 = vld [vmem:[%s798_s1 + $0x140] sm:$0xff]  ;;  %v37_v32 = vld [vmem:[%s798_s1 + $0x38] sm:$0xff] }
   0xb   :  { %221 = vmatpush.msra.mxu3 %v90_v15  ;;  %202 = vmatpush.msra.mxu2 %v73_v17  ;;  %v87_v27 = vld [vmem:[%s798_s1 + $0x1c8] sm:$0xff]  ;;  %v54_v30 = vld [vmem:[%s798_s1 + $0xc0] sm:$0xff]  ;;  %v69_v33 = vld [vmem:[%s798_s1 + $0x138] sm:$0xff] }
   0xc   :  { %182 = vmatpush.msra.mxu1 %v57_v18  ;;  %163 = vmatpush.msra.mxu0 %v40_v20  ;;  %v86_v31 = vld [vmem:[%s798_s1 + $0x1c0] sm:$0xff]  ;;  %v53_v34 = vld [vmem:[%s798_s1 + $0xb8] sm:$0xff]  ;;  %v36_v36 = vld [vmem:[%s798_s1 + $0x30] sm:$0xff] }
   0xd   :  { %222 = vmatpush.msra.mxu3 %v89_v19  ;;  %203 = vmatpush.msra.mxu2 %v72_v21  ;;  %v85_v35 = vld [vmem:[%s798_s1 + $0x1b8] sm:$0xff]  ;;  %v68_v37 = vld [vmem:[%s798_s1 + $0x130] sm:$0xff]  ;;  %v35_v40 = vld [vmem:[%s798_s1 + $0x28] sm:$0xff] }
   0xe   :  { %183 = vmatpush.msra.mxu1 %v56_v22  ;;  %164 = vmatpush.msra.mxu0 %v39_v24  ;;  %v52_v38 = vld [vmem:[%s798_s1 + $0xb0] sm:$0xff]  ;;  %v67_v41 = vld [vmem:[%s798_s1 + $0x128] sm:$0xff]  ;;  %v34_v44 = vld [vmem:[%s798_s1 + $0x20] sm:$0xff] }
   0xf   :  { %223 = vmatpush.msra.mxu3 %v88_v23  ;;  %204 = vmatpush.msra.mxu2 %v71_v25  ;;  %v84_v39 = vld [vmem:[%s798_s1 + $0x1b0] sm:$0xff]  ;;  %v51_v42 = vld [vmem:[%s798_s1 + $0xa8] sm:$0xff]  ;;  %v66_v45 = vld [vmem:[%s798_s1 + $0x120] sm:$0xff] }
  0x10   :  { %184 = vmatpush.msra.mxu1 %v55_v26  ;;  %165 = vmatpush.msra.mxu0 %v38_v28  ;;  %v83_v43 = vld [vmem:[%s798_s1 + $0x1a8] sm:$0xff]  ;;  %v50_v46 = vld [vmem:[%s798_s1 + $0xa0] sm:$0xff]  ;;  %v33_v48 = vld [vmem:[%s798_s1 + $0x18] sm:$0xff] }
  0x11   :  { %224 = vmatpush.msra.mxu3 %v87_v27  ;;  %205 = vmatpush.msra.mxu2 %v70_v29  ;;  %v82_v47 = vld [vmem:[%s798_s1 + $0x1a0] sm:$0xff]  ;;  %v65_v49 = vld [vmem:[%s798_s1 + $0x118] sm:$0xff]  ;;  %v32_v52 = vld [vmem:[%s798_s1 + $0x10] sm:$0xff] }
  0x12   :  { %185 = vmatpush.msra.mxu1 %v54_v30  ;;  %166 = vmatpush.msra.mxu0 %v37_v32  ;;  %v49_v50 = vld [vmem:[%s798_s1 + $0x98] sm:$0xff]  ;;  %v64_v53 = vld [vmem:[%s798_s1 + $0x110] sm:$0xff]  ;;  %v31_v56 = vld [vmem:[%s798_s1 + $0x8] sm:$0xff] }
  0x13   :  { %225 = vmatpush.msra.mxu3 %v86_v31  ;;  %206 = vmatpush.msra.mxu2 %v69_v33  ;;  %v81_v51 = vld [vmem:[%s798_s1 + $0x198] sm:$0xff]  ;;  %v48_v54 = vld [vmem:[%s798_s1 + $0x90] sm:$0xff]  ;;  %v63_v57 = vld [vmem:[%s798_s1 + $0x108] sm:$0xff] }
  0x14   :  { %186 = vmatpush.msra.mxu1 %v53_v34  ;;  %167 = vmatpush.msra.mxu0 %v36_v36  ;;  %v80_v55 = vld [vmem:[%s798_s1 + $0x190] sm:$0xff]  ;;  %v47_v58 = vld [vmem:[%s798_s1 + $0x88] sm:$0xff]  ;;  %v30_v60 = vld [vmem:[%s798_s1] sm:$0xff] }
  0x15   :  { %226 = vmatpush.msra.mxu3 %v85_v35  ;;  %207 = vmatpush.msra.mxu2 %v68_v37  ;;  %v79_v59 = vld [vmem:[%s798_s1 + $0x188] sm:$0xff]  ;;  %v62_v61 = vld [vmem:[%s798_s1 + $0x100] sm:$0xff]  ;;  %v109_v62 = vld [vmem:[%s798_s1 + $0x278] sm:$0xff] }
  0x16   :  { %187 = vmatpush.msra.mxu1 %v52_v38  ;;  %168 = vmatpush.msra.mxu0 %v35_v40  ;;  %v141_v63 = vld [vmem:[%s798_s1 + $0x378] sm:$0xff]  ;;  %v46_v0 = vld [vmem:[%s798_s1 + $0x80] sm:$0xff]  ;;  %v108_v2 = vld [vmem:[%s798_s1 + $0x270] sm:$0xff] }
  0x17   :  { %227 = vmatpush.msra.mxu3 %v84_v39  ;;  %208 = vmatpush.msra.mxu2 %v67_v41  ;;  %v78_v1 = vld [vmem:[%s798_s1 + $0x180] sm:$0xff]  ;;  %v125_v3 = vld [vmem:[%s798_s1 + $0x2f8] sm:$0xff]  ;;  %v140_v4 = vld [vmem:[%s798_s1 + $0x370] sm:$0xff] }
  0x18   :  { %188 = vmatpush.msra.mxu1 %v51_v42  ;;  %169 = vmatpush.msra.mxu0 %v34_v44  ;;  %v157_v5 = vld [vmem:[%s798_s1 + $0x3f8] sm:$0xff]  ;;  %v107_v6 = vld [vmem:[%s798_s1 + $0x268] sm:$0xff]  ;;  %v124_v7 = vld [vmem:[%s798_s1 + $0x2f0] sm:$0xff] }
  0x19   :  { %228 = vmatpush.msra.mxu3 %v83_v43  ;;  %209 = vmatpush.msra.mxu2 %v66_v45  ;;  %v139_v8 = vld [vmem:[%s798_s1 + $0x368] sm:$0xff]  ;;  %v156_v9 = vld [vmem:[%s798_s1 + $0x3f0] sm:$0xff]  ;;  %v106_v10 = vld [vmem:[%s798_s1 + $0x260] sm:$0xff] }
  0x1a   :  { %189 = vmatpush.msra.mxu1 %v50_v46  ;;  %170 = vmatpush.msra.mxu0 %v33_v48  ;;  %v123_v11 = vld [vmem:[%s798_s1 + $0x2e8] sm:$0xff]  ;;  %v138_v12 = vld [vmem:[%s798_s1 + $0x360] sm:$0xff]  ;;  %v105_v14 = vld [vmem:[%s798_s1 + $0x258] sm:$0xff] }
  0x1b   :  { %229 = vmatpush.msra.mxu3 %v82_v47  ;;  %210 = vmatpush.msra.mxu2 %v65_v49  ;;  %v155_v13 = vld [vmem:[%s798_s1 + $0x3e8] sm:$0xff]  ;;  %v122_v15 = vld [vmem:[%s798_s1 + $0x2e0] sm:$0xff]  ;;  %v137_v16 = vld [vmem:[%s798_s1 + $0x358] sm:$0xff] }
  0x1c   :  { %190 = vmatpush.msra.mxu1 %v49_v50  ;;  %171 = vmatpush.msra.mxu0 %v32_v52  ;;  %v154_v17 = vld [vmem:[%s798_s1 + $0x3e0] sm:$0xff]  ;;  %v104_v18 = vld [vmem:[%s798_s1 + $0x250] sm:$0xff]  ;;  %v121_v19 = vld [vmem:[%s798_s1 + $0x2d8] sm:$0xff] }
  0x1d   :  { %230 = vmatpush.msra.mxu3 %v81_v51  ;;  %211 = vmatpush.msra.mxu2 %v64_v53  ;;  %v136_v20 = vld [vmem:[%s798_s1 + $0x350] sm:$0xff]  ;;  %v153_v21 = vld [vmem:[%s798_s1 + $0x3d8] sm:$0xff]  ;;  %v103_v22 = vld [vmem:[%s798_s1 + $0x248] sm:$0xff] }
  0x1e   :  { %191 = vmatpush.msra.mxu1 %v48_v54  ;;  %172 = vmatpush.msra.mxu0 %v31_v56  ;;  %v120_v23 = vld [vmem:[%s798_s1 + $0x2d0] sm:$0xff]  ;;  %v135_v24 = vld [vmem:[%s798_s1 + $0x348] sm:$0xff]  ;;  %v102_v26 = vld [vmem:[%s798_s1 + $0x240] sm:$0xff] }
  0x1f   :  { %231 = vmatpush.msra.mxu3 %v80_v55  ;;  %212 = vmatpush.msra.mxu2 %v63_v57  ;;  %v152_v25 = vld [vmem:[%s798_s1 + $0x3d0] sm:$0xff]  ;;  %v119_v27 = vld [vmem:[%s798_s1 + $0x2c8] sm:$0xff]  ;;  %v134_v28 = vld [vmem:[%s798_s1 + $0x340] sm:$0xff] }
  0x20   :  { %192 = vmatpush.msra.mxu1 %v47_v58  ;;  %173 = vmatpush.msra.mxu0 %v30_v60  ;;  %v151_v29 = vld [vmem:[%s798_s1 + $0x3c8] sm:$0xff]  ;;  %v101_v30 = vld [vmem:[%s798_s1 + $0x238] sm:$0xff]  ;;  %v118_v31 = vld [vmem:[%s798_s1 + $0x2c0] sm:$0xff] }
  0x21   :  { %232 = vmatpush.msra.mxu3 %v79_v59  ;;  %213 = vmatpush.msra.mxu2 %v62_v61  ;;  %v133_v32 = vld [vmem:[%s798_s1 + $0x338] sm:$0xff]  ;;  %v150_v33 = vld [vmem:[%s798_s1 + $0x3c0] sm:$0xff]  ;;  %v100_v34 = vld [vmem:[%s798_s1 + $0x230] sm:$0xff] }
  0x22   :  { %238 = vmatpush.msrb.mxu0 %v109_v62  ;;  %193 = vmatpush.msra.mxu1 %v46_v0  ;;  %v117_v35 = vld [vmem:[%s798_s1 + $0x2b8] sm:$0xff]  ;;  %v132_v36 = vld [vmem:[%s798_s1 + $0x330] sm:$0xff]  ;;  %v99_v38 = vld [vmem:[%s798_s1 + $0x228] sm:$0xff] }
  0x23   :  { %278 = vmatpush.msrb.mxu2 %v141_v63  ;;  %233 = vmatpush.msra.mxu3 %v78_v1  ;;  %v149_v37 = vld [vmem:[%s798_s1 + $0x3b8] sm:$0xff]  ;;  %v116_v39 = vld [vmem:[%s798_s1 + $0x2b0] sm:$0xff]  ;;  %v131_v40 = vld [vmem:[%s798_s1 + $0x328] sm:$0xff] }
  0x24   :  { %239 = vmatpush.msrb.mxu0 %v108_v2  ;;  %258 = vmatpush.msrb.mxu1 %v125_v3  ;;  %v148_v41 = vld [vmem:[%s798_s1 + $0x3b0] sm:$0xff]  ;;  %v98_v43 = vld [vmem:[%s798_s1 + $0x220] sm:$0xff]  ;;  %v115_v44 = vld [vmem:[%s798_s1 + $0x2a8] sm:$0xff] }
  0x25   :  { %279 = vmatpush.msrb.mxu2 %v140_v4  ;;  %298 = vmatpush.msrb.mxu3 %v157_v5  ;;  %v24_v42 = vld [vmem:[%s799_s0 + $0x10] sm:$0xff]  ;;  %v130_v45 = vld [vmem:[%s798_s1 + $0x320] sm:$0xff]  ;;  %v147_v46 = vld [vmem:[%s798_s1 + $0x3a8] sm:$0xff] }
  0x26   :  { %240 = vmatpush.msrb.mxu0 %v107_v6  ;;  %259 = vmatpush.msrb.mxu1 %v124_v7  ;;  %v22_v47 = vld [vmem:[%s799_s0] sm:$0xff]  ;;  %v25_v48 = vld [vmem:[%s799_s0 + $0x18] sm:$0xff]  ;;  %v23_v53 = vld [vmem:[%s799_s0 + $0x8] sm:$0xff] }
  0x27   :  { %280 = vmatpush.msrb.mxu2 %v139_v8  ;;  %299 = vmatpush.msrb.mxu3 %v156_v9  ;;  %v97_v49 = vld [vmem:[%s798_s1 + $0x218] sm:$0xff]  ;;  %v114_v50 = vld [vmem:[%s798_s1 + $0x2a0] sm:$0xff]  ;;  %v96_v54 = vld [vmem:[%s798_s1 + $0x210] sm:$0xff] }
  0x28   :  { %241 = vmatpush.msrb.mxu0 %v106_v10  ;;  %260 = vmatpush.msrb.mxu1 %v123_v11  ;;  %v129_v51 = vld [vmem:[%s798_s1 + $0x318] sm:$0xff]  ;;  %v146_v52 = vld [vmem:[%s798_s1 + $0x3a0] sm:$0xff]  ;;  %v128_v56 = vld [vmem:[%s798_s1 + $0x310] sm:$0xff] }
  0x29   :  { %281 = vmatpush.msrb.mxu2 %v138_v12  ;;  %300 = vmatpush.msrb.mxu3 %v155_v13  ;;  %v113_v55 = vld [vmem:[%s798_s1 + $0x298] sm:$0xff]  ;;  %v95_v58 = vld [vmem:[%s798_s1 + $0x208] sm:$0xff]  ;;  %v112_v59 = vld [vmem:[%s798_s1 + $0x290] sm:$0xff] }
  0x2a   :  { %242 = vmatpush.msrb.mxu0 %v105_v14  ;;  %261 = vmatpush.msrb.mxu1 %v122_v15  ;;  %v145_v57 = vld [vmem:[%s798_s1 + $0x398] sm:$0xff]  ;;  %v127_v60 = vld [vmem:[%s798_s1 + $0x308] sm:$0xff]  ;;  %v144_v61 = vld [vmem:[%s798_s1 + $0x390] sm:$0xff] }
  0x2b   :  { %282 = vmatpush.msrb.mxu2 %v137_v16  ;;  %301 = vmatpush.msrb.mxu3 %v154_v17  ;;  %v94_v62 = vld [vmem:[%s798_s1 + $0x200] sm:$0xff]  ;;  %v111_v63 = vld [vmem:[%s798_s1 + $0x288] sm:$0xff]  ;;  %v28_v3 = vld [vmem:[%s799_s0 + $0x30] sm:$0xff] }
  0x2c   :  { %243 = vmatpush.msrb.mxu0 %v104_v18  ;;  %262 = vmatpush.msrb.mxu1 %v121_v19  ;;  %v126_v0 = vld [vmem:[%s798_s1 + $0x300] sm:$0xff]  ;;  %v143_v1 = vld [vmem:[%s798_s1 + $0x388] sm:$0xff]  ;;  %v29_v7 = vld [vmem:[%s799_s0 + $0x38] sm:$0xff] }
  0x2d   :  { %283 = vmatpush.msrb.mxu2 %v136_v20  ;;  %302 = vmatpush.msrb.mxu3 %v153_v21  ;;  %v26_v2 = vld [vmem:[%s799_s0 + $0x20] sm:$0xff]  ;;  %v27_v6 = vld [vmem:[%s799_s0 + $0x28] sm:$0xff] }
  0x2e   :  { %244 = vmatpush.msrb.mxu0 %v103_v22  ;;  %263 = vmatpush.msrb.mxu1 %v120_v23  ;;  %v110_v4 = vld [vmem:[%s798_s1 + $0x280] sm:$0xff] }
  0x2f   :  { %284 = vmatpush.msrb.mxu2 %v135_v24  ;;  %303 = vmatpush.msrb.mxu3 %v152_v25  ;;  %v142_v5 = vld [vmem:[%s798_s1 + $0x380] sm:$0xff] }
  0x30   :  { %245 = vmatpush.msrb.mxu0 %v102_v26  ;;  %264 = vmatpush.msrb.mxu1 %v119_v27  ;;  %v351_v21 = vld [vmem:[%s800_s2] ss:$0 sm:$0xff] }
  0x31   :  { %285 = vmatpush.msrb.mxu2 %v134_v28  ;;  %304 = vmatpush.msrb.mxu3 %v151_v29 }
  0x32   :  { %246 = vmatpush.msrb.mxu0 %v101_v30  ;;  %265 = vmatpush.msrb.mxu1 %v118_v31 }
  0x33   :  { %286 = vmatpush.msrb.mxu2 %v133_v32  ;;  %305 = vmatpush.msrb.mxu3 %v150_v33 }
  0x34   :  { %247 = vmatpush.msrb.mxu0 %v100_v34  ;;  %266 = vmatpush.msrb.mxu1 %v117_v35 }
  0x35   :  { %287 = vmatpush.msrb.mxu2 %v132_v36  ;;  %306 = vmatpush.msrb.mxu3 %v149_v37 }
  0x36   :  { %248 = vmatpush.msrb.mxu0 %v99_v38  ;;  %267 = vmatpush.msrb.mxu1 %v116_v39 }
  0x37   :  { %288 = vmatpush.msrb.mxu2 %v131_v40  ;;  %307 = vmatpush.msrb.mxu3 %v148_v41 }
  0x38   :  { %214 = vmatmul.f32.vlgmr.msra.gmra.mxu2 %v24_v42  ;;  %249 = vmatpush.msrb.mxu0 %v98_v43 }
  0x39   :  { %268 = vmatpush.msrb.mxu1 %v115_v44  ;;  %289 = vmatpush.msrb.mxu2 %v130_v45 }
  0x3a   :  { %308 = vmatpush.msrb.mxu3 %v147_v46  ;;  %174 = vmatmul.f32.vlgmr.msra.gmra.mxu0 %v22_v47 }
  0x3b   :  { %234 = vmatmul.f32.vlgmr.msra.gmra.mxu3 %v25_v48  ;;  %250 = vmatpush.msrb.mxu0 %v97_v49 }
  0x3c   :  { %269 = vmatpush.msrb.mxu1 %v114_v50  ;;  %290 = vmatpush.msrb.mxu2 %v129_v51 }
  0x3d   :  { %309 = vmatpush.msrb.mxu3 %v146_v52  ;;  %194 = vmatmul.f32.vlgmr.msra.gmra.mxu1 %v23_v53 }
  0x3e   :  { %251 = vmatpush.msrb.mxu0 %v96_v54  ;;  %270 = vmatpush.msrb.mxu1 %v113_v55 }
  0x3f   :  { %291 = vmatpush.msrb.mxu2 %v128_v56  ;;  %310 = vmatpush.msrb.mxu3 %v145_v57 }
  0x40   :  { %252 = vmatpush.msrb.mxu0 %v95_v58  ;;  %271 = vmatpush.msrb.mxu1 %v112_v59 }
  0x41   :  { %292 = vmatpush.msrb.mxu2 %v127_v60  ;;  %311 = vmatpush.msrb.mxu3 %v144_v61 }
  0x42   :  { %253 = vmatpush.msrb.mxu0 %v94_v62  ;;  %272 = vmatpush.msrb.mxu1 %v111_v63 }
  0x43   :  { %293 = vmatpush.msrb.mxu2 %v126_v0  ;;  %312 = vmatpush.msrb.mxu3 %v143_v1 }
  0x44   :  { %254 = vmatmul.f32.vlgmr.msrb.gmra.mxu0 %v26_v2  ;;  %294 = vmatmul.f32.vlgmr.msrb.gmra.mxu2 %v28_v3 }
  0x45   :  { %273 = vmatpush.msrb.mxu1 %v110_v4  ;;  %313 = vmatpush.msrb.mxu3 %v142_v5 }
  0x46   :  { %274 = vmatmul.f32.vlgmr.msrb.gmra.mxu1 %v27_v6  ;;  %314 = vmatmul.f32.vlgmr.msrb.gmra.mxu3 %v29_v7 }
  0xb7   :  { %v175_v8 = vpop.f32.mrf.mxu0 }
  0xba   :  { %v195_v9 = vpop.f32.mrf.mxu1 }
  0xbb   :  { %v196_v10 = vadd.f32 %v195_v9, %v175_v8  ;;  %v215_v11 = vpop.f32.mrf.mxu2 }
  0xbd   :  { %v216_v12 = vadd.f32 %v215_v11, %v196_v10 }
  0xbe   :  { %v235_v13 = vpop.f32.mrf.mxu3 }
  0xbf   :  { %v236_v14 = vadd.f32 %v235_v13, %v216_v12 }
  0xc1   :  { %v255_v15 = vpop.f32.mrf.mxu0 }
  0xc2   :  { %v256_v16 = vadd.f32 %v255_v15, %v236_v14 }
  0xc3   :  { %v275_v17 = vpop.f32.mrf.mxu1 }
  0xc4   :  { %v276_v18 = vadd.f32 %v275_v17, %v256_v16 }
  0xc7   :  { %v295_v19 = vpop.f32.mrf.mxu2 }
  0xc8   :  { %v296_v20 = vadd.f32 %v295_v19, %v276_v18 }
  0xc9   :  { %v315_v22 = vpop.f32.mrf.mxu3 }
  0xca   :  { %v316_v23 = vadd.f32 %v315_v22, %v296_v20 }
  0xcc   :  { %v328_v24 = vadd.f32 %v351_v21, %v316_v23 }
  0xce   :  { %329 = vst [vmem:[%s801_s3] sm:$0xff] %v328_v24  ;;  %330 = vmax.xlane.f32.xlu0 %v328_v24 }
 0x141   :  { %v331_v25 = vpop.xlane.xlu0 %330 }
 0x142   :  { %v332_v26 = vsub.f32 %v328_v24, %v331_v25 }
 0x144   :  { %v333_v27 = vmul.f32 1.442695, %v332_v26 }
 0x146   :  { %352 = vpow2.f32 %v333_v27 }
 0x14c   :  { %v353_v28 = vpop.eup %352 }
 0x14d   :  { %335 = vadd.xlane.f32.xlu0 %v353_v28 }
 0x1c0   :  { %v336_v29 = vpop.xlane.xlu0 %335 }
 0x1c1   :  { %354 = vrcp.f32 %v336_v29 }
 0x1c7   :  { %v355_v30 = vpop.eup %354 }
 0x1c8   :  { %v338_v31 = vmul.f32 %v355_v30, %v336_v29 }
 0x1ca   :  { %v339_v32 = vsub.f32 2.0, %v338_v31 }
 0x1cc   :  { %v340_v33 = vmul.f32 %v355_v30, %v339_v32 }
 0x1ce   :  { %v341_v34 = vmul.f32 %v353_v28, %v340_v33 }
 0x1d0   :  { %342 = vst [vmem:[%s802_s4] sm:$0xff] %v341_v34 }

</bundles_post_ra>
